<compile_context>
chip_gen: v7x
topology: tpu7x:2x2x1
jax: 0.10.0
libtpu: 0.0.40
codegen_flags: <defaults>
</compile_context>

<pallas_src>
import jax
import jax.numpy as jnp
from jax.experimental import pallas as pl
from jax.experimental.pallas import tpu as pltpu


_SMALL_INPUT_BYTES = 1 << 20  # below this, plain XLA beats a pallas_call launch


def _round_up(x, m):
    return ((x + m - 1) // m) * m


def _chip_config():
    """Per-generation (tile_bytes, vmem_limit, force_two_blocks).

    Falls back to v7x-safe defaults if the hardware query is unavailable.
    """
    tile_bytes = 4 * 1024 * 1024          # safe / near-roofline on every generation
    vmem_limit = 48 * 1024 * 1024
    force_two_blocks = True               # v7x: make sure both TensorCores get work
    try:
        info = pltpu.get_tpu_info()
        vmem = getattr(info, "vmem_capacity_bytes", None)
        if vmem is not None and vmem > 64 * 1024 * 1024:
            # v5e / v6e: 128 MiB VMEM, single TensorCore -> bigger tiles,
            # fewer grid steps, no forced feature/batch split.
            tile_bytes = 8 * 1024 * 1024
            vmem_limit = 64 * 1024 * 1024
            force_two_blocks = False
    except Exception:
        pass
    return tile_bytes, vmem_limit, force_two_blocks


def _select_tiles(B, D, itemsize, tile_bytes, force_two_blocks):
    """Pick (TB, TD): batch rows and feature lanes per block (load-balanced)."""
    # Batch tile: multiple of 8 (or the full batch), balanced so the trailing
    # block is not almost entirely out-of-bounds.
    max_tb = 256
    if B <= max_tb:
        TB = B
    else:
        nb = pl.cdiv(B, max_tb)
        TB = min(max_tb, _round_up(pl.cdiv(B, nb), 8))

    # Feature tile: multiple of 128 (or the full feature dim), sized so one
    # x tile is ~tile_bytes in x's own dtype (works for f32 and bf16 alike).
    budget_elems = max(tile_bytes // max(itemsize, 1), 8 * 128)
    td_cap = max(128, (budget_elems // max(TB, 1)) // 128 * 128)
    if D <= td_cap:
        TD = D                      # whole (possibly ragged) feature axis in one block
    else:
        nd = pl.cdiv(D, td_cap)
        TD = min(_round_up(pl.cdiv(D, nd), 128), _round_up(td_cap, 128))

    # v7x-like chips (2 TensorCores sharing HBM BW): guarantee >= 2 blocks so
    # both cores are fed; prefer splitting the batch over shrinking lane tiles.
    if force_two_blocks and pl.cdiv(B, TB) * pl.cdiv(D, TD) < 2:
        if B >= 16:
            TB = _round_up(pl.cdiv(B, 2), 8)
        elif D >= 256:
            TD = _round_up(pl.cdiv(D, 2), 128)
    return TB, TD


def _encode_kernel(x_ref, mean_ref, inv_std_ref, o_ref):
    # (x - mean) * inv_std ; mean/inv_std are (1, TD) and broadcast over the
    # batch rows of the (TB, TD) x block.  f32 math, cast back to x's dtype.
    x = x_ref[...].astype(jnp.float32)
    o_ref[...] = ((x - mean_ref[...]) * inv_std_ref[...]).astype(o_ref.dtype)


def _pallas_encode(x2, mean2, inv_std2, *, tile_bytes=None):
    """x2: (B, D); mean2/inv_std2: (1, D) float32.  Returns (B, D) in x2.dtype."""
    B, D = x2.shape
    cfg_tile, vmem_limit, force_two_blocks = _chip_config()
    if tile_bytes is None:
        tile_bytes = cfg_tile
    TB, TD = _select_tiles(B, D, x2.dtype.itemsize, tile_bytes, force_two_blocks)
    grid = (pl.cdiv(D, TD), pl.cdiv(B, TB))  # feature blocks outer, batch inner

    return pl.pallas_call(
        _encode_kernel,
        out_shape=jax.ShapeDtypeStruct((B, D), x2.dtype),
        grid_spec=pltpu.PrefetchScalarGridSpec(
            num_scalar_prefetch=0,
            grid=grid,
            in_specs=[
                pl.BlockSpec((TB, TD), lambda d, b: (b, d)),
                pl.BlockSpec((1, TD), lambda d, b: (0, d)),
                pl.BlockSpec((1, TD), lambda d, b: (0, d)),
            ],
            out_specs=pl.BlockSpec((TB, TD), lambda d, b: (b, d)),
        ),
        compiler_params=pltpu.CompilerParams(
            dimension_semantics=("parallel", "parallel"),
            vmem_limit_bytes=vmem_limit,
        ),
    )(x2, mean2, inv_std2)


class UnitGaussianNormalizer:
    """JAX/Pallas port of the PyTorch UnitGaussianNormalizer (forward == encode)."""

    def __init__(self, x=None, size=1, eps=1e-08):
        assert x is not None or size is not None, "Input or size must be specified."
        if x is not None:
            # torch.mean(x, 0).view(-1) / torch.std(x, 0).view(-1) (unbiased, ddof=1).
            # NOTE: like PyTorch, fitting on a single sample yields std = NaN.
            mean = jnp.mean(x, axis=0).reshape(-1)
            std = jnp.std(x, axis=0, ddof=1).reshape(-1)
        else:
            mean = jnp.zeros((size,), dtype=jnp.float32)
            std = jnp.ones((size,), dtype=jnp.float32)
        self.mean = mean.astype(jnp.float32)
        self.std = std.astype(jnp.float32)
        self.eps = float(eps)
        # Everything the encode hot path needs, hoisted out of encode():
        self._mean2 = self.mean.reshape(1, -1)                          # (1, D) f32
        self._inv_std2 = (1.0 / (self.std + self.eps)).reshape(1, -1)   # (1, D) f32

    def encode(self, x):
        s = x.shape
        x2 = x.reshape(s[0], -1)  # (B, D), row-major like torch's x.view(s[0], -1)
        B, D = x2.shape
        if B * D * x2.dtype.itemsize < _SMALL_INPUT_BYTES:
            # Tiny inputs: pallas_call launch overhead dominates; let XLA fuse it.
            out = ((x2 - self._mean2) * self._inv_std2).astype(x2.dtype)
        else:
            out = _pallas_encode(x2, self._mean2, self._inv_std2)
        return out.reshape(s)

    def decode(self, x):
        # TODO(synk): decode path kept in plain JAX (not the forward hot path).
        s = x.shape
        x2 = x.reshape(s[0], -1)
        x2 = x2 * (self.std + self.eps) + self.mean
        return x2.reshape(s)

    def __call__(self, x):
        return self.encode(x)


if __name__ == "__main__":
    key = jax.random.PRNGKey(0)
    k1, k2, k3, k4 = jax.random.split(key, 4)

    # --- 1) Module-sized small input (fast path; semantics check vs. reference) ---
    x_fit = jax.random.normal(k1, (8, 4, 16, 16), dtype=jnp.float32) * 2.0 + 0.5
    norm = UnitGaussianNormalizer(x=x_fit, eps=1e-08)
    x_small = jax.random.normal(k2, (2, 4, 16, 16), dtype=jnp.float32) * 2.0 + 0.5
    y_small = jax.block_until_ready(norm(x_small))
    mean = jnp.mean(x_fit, axis=0).reshape(-1)
    std = jnp.std(x_fit, axis=0, ddof=1).reshape(-1)
    ref_small = ((x_small.reshape(2, -1) - mean) / (std + 1e-08)).reshape(x_small.shape)
    assert jnp.allclose(y_small, ref_small, atol=1e-5, rtol=1e-5), "small-input mismatch"

    # --- 2) Larger input with ragged feature dim (D = 3*17*19 = 969, not a
    #        multiple of 128): exercises the Pallas path, no padding of x. ---
    x_fit2 = jax.random.normal(k3, (8, 3, 17, 19), dtype=jnp.float32) + 1.0
    norm2 = UnitGaussianNormalizer(x=x_fit2, eps=1e-08)
    x_big = jax.random.normal(k4, (288, 3, 17, 19), dtype=jnp.float32) * 1.5 - 0.25
    y_big = jax.block_until_ready(norm2(x_big))
    mean2 = jnp.mean(x_fit2, axis=0).reshape(-1)
    std2 = jnp.std(x_fit2, axis=0, ddof=1).reshape(-1)
    ref_big = ((x_big.reshape(288, -1) - mean2) / (std2 + 1e-08)).reshape(x_big.shape)
    assert jnp.allclose(y_big, ref_big, atol=1e-4, rtol=1e-4), "pallas-path mismatch"

    # --- 3) Same data, tiny forced tile budget so the trailing ragged feature
    #        block (969 % 128 != 0) goes through Pallas edge-block clamping. ---
    y_edge = _pallas_encode(
        x_big.reshape(288, -1), norm2._mean2, norm2._inv_std2,
        tile_bytes=128 * 128 * 4)
    y_edge = jax.block_until_ready(y_edge)
    assert jnp.allclose(y_edge.reshape(x_big.shape), ref_big, atol=1e-4, rtol=1e-4), \
        "edge-block mismatch"

    print("KERNEL_OK")
</pallas_src>

<mosaic_0001>
module attributes {stable_mosaic.version = 11 : i64} {
  func.func @_encode_kernel(%arg0: i32, %arg1: i32, %arg2: memref<144x969xf32, #tpu.memory_space<vmem>>, %arg3: memref<1x969xf32, #tpu.memory_space<vmem>>, %arg4: memref<1x969xf32, #tpu.memory_space<vmem>>, %arg5: memref<144x969xf32, #tpu.memory_space<vmem>>) attributes {dimension_semantics = [#tpu.dimension_semantics<parallel>, #tpu.dimension_semantics<parallel>], iteration_bounds = array<i64: 1, 2>, scalar_prefetch = 0 : i64, scratch_operands = 0 : i64, tpu.core_type = #tpu.core_type<tc>, window_params = [{transform_indices = @transform_0, window_bounds = array<i64: 144, 969>}, {transform_indices = @transform_1, window_bounds = array<i64: 1, 969>}, {transform_indices = @transform_2, window_bounds = array<i64: 1, 969>}, {transform_indices = @transform_3, window_bounds = array<i64: 144, 969>}]} {
    %c0 = arith.constant 0 : index
    %c0_0 = arith.constant 0 : index
    %0 = vector.load %arg2[%c0, %c0_0] : memref<144x969xf32, #tpu.memory_space<vmem>>, vector<144x969xf32>
    %c0_1 = arith.constant 0 : index
    %c0_2 = arith.constant 0 : index
    %1 = vector.load %arg3[%c0_1, %c0_2] : memref<1x969xf32, #tpu.memory_space<vmem>>, vector<1x969xf32>
    %2 = vector.broadcast %1 : vector<1x969xf32> to vector<144x969xf32>
    %3 = arith.subf %0, %2 : vector<144x969xf32>
    %c0_3 = arith.constant 0 : index
    %c0_4 = arith.constant 0 : index
    %4 = vector.load %arg4[%c0_3, %c0_4] : memref<1x969xf32, #tpu.memory_space<vmem>>, vector<1x969xf32>
    %5 = vector.broadcast %4 : vector<1x969xf32> to vector<144x969xf32>
    %6 = arith.mulf %3, %5 : vector<144x969xf32>
    %c0_5 = arith.constant 0 : index
    %c0_6 = arith.constant 0 : index
    %7 = vector.load %arg5[%c0_5, %c0_6] : memref<144x969xf32, #tpu.memory_space<vmem>>, vector<144x969xf32>
    tpu.vector_store %arg5[%c0_5, %c0_6], %6 {strides = array<i32>} : memref<144x969xf32, #tpu.memory_space<vmem>>, vector<144x969xf32>,
    return
  }
  func.func @transform_0(%arg0: i32, %arg1: i32) -> (i32, i32) {
    %c0_i32 = arith.constant 0 : i32
    return %arg1, %arg0 : i32, i32
  }
  func.func @transform_1(%arg0: i32, %arg1: i32) -> (i32, i32) {
    %c0_i32 = arith.constant 0 : i32
    %c0_i32_0 = arith.constant 0 : i32
    return %c0_i32, %arg0 : i32, i32
  }
  func.func @transform_2(%arg0: i32, %arg1: i32) -> (i32, i32) {
    %c0_i32 = arith.constant 0 : i32
    %c0_i32_0 = arith.constant 0 : i32
    return %c0_i32, %arg0 : i32, i32
  }
  func.func @transform_3(%arg0: i32, %arg1: i32) -> (i32, i32) {
    %c0_i32 = arith.constant 0 : i32
    return %arg1, %arg0 : i32, i32
  }
}

</mosaic_0001>

<bundles_post_ra>
// kernel: tpu_custom_call.1
= control target key start
LH: loop header
LB: loop body
LE: loop exit
PB: predicated region body
PF: predicated region fallthrough
CT: control target
= control target key end

     0   :  { %8 = vsyncpa [#allocation3], 0  ;;  %s2238_s0 = inlined_call_operand.hbm [shape: f32[288,969], index: 0, kind: input, shape index: {}]   ;;  %s2239_s1 = inlined_call_operand.hbm [shape: f32[1,969], index: 1, kind: input, shape index: {}]   ;;  %s2240_s2 = inlined_call_operand.hbm [shape: f32[1,969], index: 2, kind: input, shape index: {}]   ;;  %s2241_s3 = inlined_call_operand.hbm [shape: f32[288,969], index: 3, kind: output, shape index: {}]  }
   0x1   :  { %10 = vsyncpa [#allocation3 + $0x1], 0 }
   0x2   :  { %11 = vsyncpa [#allocation6], 0 }
   0x3   :  { %12 = vsyncpa [#allocation4], 0 }
   0x4   :  { %14 = vsyncpa [#allocation4 + $0x1], 0  ;;  %s1355_s12 = smov 0   ;;  %s1357_s13 = smov 0  }
   0x5   :  { %s1359_s14 = smov 0   ;;  %s1361_s15 = smov 0  }
   0x6   :  { %s1363_s16 = smov 0   ;;  %s1365_s17 = smov 0  }
   0x7 LB: > { %s1043_s18 = sadd.s32 4294967295, %s1325_s17   ;;  %s1044_s19 = sadd.s32 4294967294, %s1325_s17   ;;  %s1325_s17 = sphi %s1365_s17, %s20_s17   ;;  %s1321_s16 = sphi %s1363_s16, %s2267_s16   ;;  %s1317_s15 = sphi %s1361_s15, %s2266_s15   ;;  %s1313_s14 = sphi %s1359_s14, %s2265_s14   ;;  %s1309_s13 = sphi %s1357_s13, %s2264_s13   ;;  %s1305_s12 = sphi %s1355_s12, %s2263_s12  }
   0x8   : > { %s41_s20 = sadd.s32 1, %s1313_s14  ;;  %p48_p0 = scmp.ne.s32.totalorder %s1313_s14, %s1309_s13 }
   0x9   : > { %p49_p1 = scmp.eq.s32.totalorder %s1325_s17, 0  ;;  %p54_p2 = scmp.ne.s32.totalorder %s1309_s13, %s1305_s12 }
   0xa   : > { %p1393_p3 = scmp.eq.s32.totalorder %s1043_s18, 0  ;;  %p132_p4 = scmp.eq.s32.totalorder %s1043_s18, 1 }
   0xb   : > { %p1397_p5 = por %p49_p1, %p48_p0  ;;  %p138_p6 = scmp.eq.s32.totalorder %s1044_s19, 1 }
   0xc   : > { %s2248_s21 = scalar_select %p1393_p3, 1, 0 }
   0xd   : > { %p1403_p7 = por %p1393_p3, %p54_p2  ;;  %p1407_p8 = por %p132_p4, %p48_p0 }
   0xe   : > { %p1411_p9 = por %p138_p6, %p54_p2  ;;  %p1045_p10 = scmp.ge.s32.totalorder %s1325_s17, 1 }
   0xf   : > { %s2250_s23 = scalar_select %p1403_p7, 1, 0 }
  0x10   : > { %s2251_s24 = scalar_select %p1407_p8, 1, 0 }
  0x11   : > { %s2252_s25 = scalar_select %p1411_p9, 1, 0 }
  0x12   : > { %p145_p11 = scmp.lt.s32.totalorder %s1325_s17, 3  ;;  %s1327_s27 = smov [#allocation5]  }
  0x13   : > { %s161_s28 = sshll.u32 %s1327_s27, 4  ;;  %p1095_p1 = scmp.lt.s32.totalorder %s1325_s17, 2  ;;  %s162_s28 = int_to_ptr.vmem [resolvable:$true] %s161_s28 }
  0x14   : > { %p1418_p13 = pnand %p1045_p10, %p145_p11  ;;  %s1328_s30 = smov [#allocation7]  }
  0x15   : > { %p1427_p4 = pnand %p1095_p1, %p1397_p5  ;;  %s175_s4 = sshll.u32 %s1328_s30, 4  ;;  %s1437_s4 = int_to_ptr.vmem [resolvable:$true] %s175_s4 }
  0x16   : > { %s2253_s26 = scalar_select %p1418_p13, 1, 0 }
  0x17   : > { %p1078_p0 = pneg %p1418_p13  ;;  %s1153_s8 = scalar_lea.hbm %s2239_s1, 128 }
  0x18   : > { %s2254_s29 = scalar_select %p1427_p4, 1, 0 }
  0x19   : > { %p1433_p2 = pnand %p1078_p0, %p1393_p3  ;;  %p1154_p5 = scmp.ne.s32.totalorder %s2239_s1, %s1153_s8 }
  0x1a   : > { %p1160_p1 = scmp.lt.u32.totalorder %s1153_s8, %s2239_s1 }
  0x1b   : > { %p1155_p6 = pneg %p1433_p2 }
  0x1d   : > { %p1156_p10 = pnand %p1155_p6, %p1154_p5 }
  0x1f   : > { %p1157_p11 = pneg %p1156_p10 }
  0x21   : > { %p1162_p0 = pnand %p1160_p1, %p1157_p11 }
  0x23   : > { %1165 = shalt.err (!%p1162_p0)
}
  0x24   : > { %s1166_s19 = scalar_lea.vmem %s162_s28, 128  ;;  %p1174_p3 = scmp.lt.s32.totalorder %s162_s28, %s162_s28 }
  0x25   : > { %p1167_p12 = scmp.ne.s32.totalorder %s162_s28, %s1166_s19  ;;  %p1175_p7 = scmp.lt.s32.totalorder %s1166_s19, %s1166_s19 }
  0x27   : > { %p1169_p9 = pnand %p1167_p12, %p1155_p6  ;;  %p1176_p13 = por %p1175_p7, %p1174_p3 }
  0x29   : > { %p1170_p8 = pneg %p1169_p9 }
  0x2b   : > { %p1177_p4 = pnand %p1176_p13, %p1170_p8 }
  0x2d   : > { %1180 = shalt.err (!%p1177_p4)
}
  0x2e   : > { %1081 = dma.hbm_to_vmem [thread:$0]  (!%p1433_p2), %s2239_s1, 128, %s162_s28, [#allocation6]  }
  0x2f   : > { %s1181_s7 = scalar_lea.hbm %s2240_s2, 128 }
  0x30   : > { %p1182_p9 = scmp.ne.s32.totalorder %s2240_s2, %s1181_s7  ;;  %p1188_p8 = scmp.lt.u32.totalorder %s1181_s7, %s2240_s2 }
  0x32   : > { %p1184_p3 = pnand %p1182_p9, %p1155_p6 }
  0x34   : > { %p1185_p7 = pneg %p1184_p3 }
  0x36   : > { %p1190_p12 = pnand %p1188_p8, %p1185_p7 }
  0x38   : > { %1193 = shalt.err (!%p1190_p12)
}
  0x39   : > { %s1194_s28 = scalar_lea.vmem %s1437_s4, 128  ;;  %p1202_p10 = scmp.lt.s32.totalorder %s1437_s4, %s1437_s4 }
  0x3a   : > { %p1195_p13 = scmp.ne.s32.totalorder %s1437_s4, %s1194_s28  ;;  %p1203_p11 = scmp.lt.s32.totalorder %s1194_s28, %s1194_s28 }
  0x3c   : > { %p1197_p4 = pnand %p1195_p13, %p1155_p6  ;;  %p1204_p1 = por %p1203_p11, %p1202_p10 }
  0x3e   : > { %p1198_p5 = pneg %p1197_p4 }
  0x40   : > { %p1205_p0 = pnand %p1204_p1, %p1198_p5 }
  0x42   : > { %1208 = shalt.err (!%p1205_p0)
}
  0x43   : > { %1084 = dma.hbm_to_vmem [thread:$0]  (!%p1433_p2), %s2240_s2, 128, %s1437_s4, [#allocation6]  }
  0x44   : > { %s29_s22 = sadd.s32 1, %s1321_s16  ;;  %s186_s27 = sand.u32 1, %s1313_s14  }
  0x45   : > { %p30_p6 = scmp.ge.s32.totalorder %s29_s22, 2  ;;  %s1064_s30 = smul.u32 1152, %s186_s27 }
  0x46   : > { %s1062_s5 = smul.u32 18432, %s1321_s16  ;;  %s1505_s28 = scalar_lea.sflag [#allocation3], %s186_s27 }
  0x47   : > { %s2269_s22 = smov (%p30_p6, %s29_s22), 0  ;;  %s190_s7 = scalar_lea.vmem [#allocation2], %s1064_s30 }
  0x48   : > { %s36_s6 = ssub.s32 %s1321_s16, %s2269_s22  ;;  %s200_s8 = sshll.u32 %s190_s7, 4  ;;  %s1498_s8 = int_to_ptr.vmem [resolvable:$true] %s200_s8 }
  0x49   : > { %p39_p9 = scmp.eq.s32.totalorder %s36_s6, 0  ;;  %s1496_s11 = scalar_lea.hbm %s2238_s0, %s1062_s5 }
  0x4a   : > { %s1209_s18 = scalar_lea.hbm %s1496_s11, 18432  ;;  %p2256_p3 = scmp.ne.s32.totalorder %s2254_s29, 0 }
  0x4b   : > { %s1503_s4 = scalar_select %p39_p9, %s1313_s14, %s41_s20  }
  0x4c   : > { %p1210_p2 = scmp.ne.s32.totalorder %s1496_s11, %s1209_s18  ;;  %p1211_p7 = pneg %p2256_p3 }
  0x4d   : > { %s1214_s5 = scalar_lea.hbm %s2238_s0, 36864  ;;  %p1215_p13 = scmp.lt.u32.totalorder %s1496_s11, %s2238_s0 }
  0x4e   : > { %p1212_p8 = pnand %p1211_p7, %p1210_p2  ;;  %p1216_p4 = scmp.lt.u32.totalorder %s1214_s5, %s1209_s18 }
  0x4f   : > { %p1218_p10 = scmp.lt.u32.totalorder %s1209_s18, %s1496_s11 }
  0x50   : > { %p1213_p12 = pneg %p1212_p8  ;;  %p1217_p5 = por %p1216_p4, %p1215_p13 }
  0x52   : > { %p1219_p11 = por %p1218_p10, %p1217_p5 }
  0x54   : > { %p1220_p1 = pnand %p1219_p11, %p1213_p12 }
  0x56   : > { %1223 = shalt.err (!%p1220_p1)
}
  0x57   : > { %s1224_s20 = scalar_lea.vmem %s1498_s8, 18432  ;;  %s1329_s27 = smov [#allocation2]  }
  0x58   : > { %p1225_p0 = scmp.ne.s32.totalorder %s1498_s8, %s1224_s20  ;;  %s1229_s9 = sshll.u32 %s1329_s27, 4  ;;  %s1230_s9 = int_to_ptr.vmem [resolvable:$false] %s1229_s9 }
  0x59   : > { %s1231_s10 = scalar_lea.vmem %s1230_s9, 36864  ;;  %p1232_p2 = scmp.lt.s32.totalorder %s1498_s8, %s1230_s9 }
  0x5a   : > { %p1227_p6 = pnand %p1225_p0, %p1211_p7  ;;  %p1233_p8 = scmp.lt.s32.totalorder %s1231_s10, %s1224_s20 }
  0x5c   : > { %p1228_p9 = pneg %p1227_p6  ;;  %p1234_p13 = por %p1233_p8, %p1232_p2 }
  0x5e   : > { %p1235_p4 = pnand %p1234_p13, %p1228_p9 }
  0x60   : > { %1238 = shalt.err (!%p1235_p4)
}
  0x61   : > { %s1330_s18 = smov 1024   ;;  %s1331_s19 = smov 64  }
  0x62   : > { %1088 = dma.hbm_to_vmem [thread:$0]  (!%p2256_p3), %s1496_s11, 18432, %s1498_s8, %s1505_s28, %s1330_s18, %s1330_s18, %s1331_s19  }
  0x63   : > { %p2257_p7 = scmp.ne.s32.totalorder %s2253_s26, 0 }
  0x64   : > { %s1536_s30 = sand.u32 (!%p2257_p7), 1, %s1309_s13   ;;  %p2258_p12 = scmp.ne.s32.totalorder (!%p2257_p7), %s2250_s23, 0 }
  0x65   : > { %212 = sbr.rel (%p2257_p7) target bundleno = 225 (0xe1), region = 32  ;;  %s215_s6 = scalar_lea.sflag (!%p2257_p7), [#allocation3], %s1536_s30 }
  0x66   : > { %s1065_s5 = smul.u32 (!%p2257_p7), 1152, %s1536_s30 }
  0x68   : > { %s1542_s7 = scalar_lea.vmem (!%p2257_p7), [#allocation2], %s1065_s5 }
  0x6c   : > { %1292 = dma.done.wait (%p2258_p12), %s215_s6, 18432  }
  0x6d   : > { %1294 = vsyncadd (%p2258_p12), %s215_s6, 4294948864  ;;  %p2259_p3 = scmp.ne.s32.totalorder %s2248_s21, 0 }
  0x6f   : > { %1296 = dma.done.wait (%p2259_p3), [#allocation6], 256  }
  0x70   : > { %1298 = vsyncadd (%p2259_p3), [#allocation6], 4294967040  ;;  %v401_v0 = vlaneseq  ;;  %v255_v7 = vld [vmem:[%s1542_s7] sm:$0xff]  ;;  %v585_v9 = vld [vmem:[#allocation7] sm:$0xff]  ;;  %vm778_vm0 = vcmask 596992   ;;  %s1605_s21 = scalar_lea.vmem [#allocation8], %s1065_s5 }
  0x71   : > { %v399_v8 = vld [vmem:[#allocation5] sm:$0xff]  ;;  %v256_v15 = vld [vmem:[%s1542_s7 + $0x8] sm:$0xff]  ;;  %v257_v18 = vld [vmem:[%s1542_s7 + $0x10] sm:$0xff]  ;;  %s1063_s23 = smul.u32 18432, %s1317_s15  ;;  %s933_s26 = sshll.u32 %s1605_s21, 4  ;;  %s2179_s26 = int_to_ptr.vmem [resolvable:$true] %s933_s26 }
  0x72   : > { %v402_v1 = vshrl.u32 %v401_v0, 7  ;;  %v258_v19 = vld [vmem:[%s1542_s7 + $0x18] sm:$0xff]  ;;  %v259_v24 = vld [vmem:[%s1542_s7 + $0x20] sm:$0xff]  ;;  %v260_v29 = vld [vmem:[%s1542_s7 + $0x28] sm:$0xff]  ;;  %s917_s11 = scalar_lea.sflag [#allocation4], %s1536_s30  ;;  %s1239_s28 = scalar_lea.vmem %s2179_s26, 18432 }
  0x73   : > { %v261_v34 = vld [vmem:[%s1542_s7 + $0x30] sm:$0xff]  ;;  %v263_v39 = vld [vmem:[%s1542_s7 + $0x40] sm:$0xff]  ;;  %v264_v40 = vld [vmem:[%s1542_s7 + $0x48] sm:$0xff]  ;;  %s2186_s8 = scalar_lea.hbm %s2241_s3, %s1063_s23  ;;  %p1240_p5 = scmp.ne.s32.totalorder %s2179_s26, %s1239_s28 }
  0x74   : > { %v403_v2 = vsub.s32 0, %v402_v1  ;;  %v407_v3 = vsub.s32 1, %v402_v1  ;;  %v411_v4 = vsub.s32 2, %v402_v1  ;;  %v415_v5 = vsub.s32 3, %v402_v1  ;;  %v265_v41 = vld [vmem:[%s1542_s7 + $0x50] sm:$0xff]  ;;  %v262_v46 = vld [vmem:[%s1542_s7 + $0x38] sm:$0xff] }
  0x75   : > { %v419_v6 = vsub.s32 4, %v402_v1  ;;  %v423_v10 = vsub.s32 5, %v402_v1  ;;  %v427_v11 = vsub.s32 6, %v402_v1  ;;  %v431_v12 = vsub.s32 7, %v402_v1  ;;  %v266_v47 = vld [vmem:[%s1542_s7 + $0x58] sm:$0xff]  ;;  %v267_v48 = vld [vmem:[%s1542_s7 + $0x60] sm:$0xff] }
  0x76   : > { %v1553_v13 = vrot.slane %v399_v8, %v403_v2  ;;  %v1555_v14 = vrot.slane %v585_v9, %v403_v2  ;;  %v1558_v16 = vrot.slane %v399_v8, %v407_v3  ;;  %v1560_v17 = vrot.slane %v585_v9, %v407_v3  ;;  %v268_v53 = vld [vmem:[%s1542_s7 + $0x68] sm:$0xff]  ;;  %v269_v58 = vld [vmem:[%s1542_s7 + $0x70] sm:$0xff]  ;;  %v270_v63 = vld [vmem:[%s1542_s7 + $0x78] sm:$0xff]  ;;  %p2260_p10 = scmp.ne.s32.totalorder %s2251_s24, 0  ;;  %s1332_s20 = smov [#allocation8]  }
  0x77   : > { %v1564_v20 = vrot.slane %v399_v8, %v411_v4  ;;  %v1566_v21 = vrot.slane %v585_v9, %v411_v4  ;;  %v1568_v22 = vrot.slane %v399_v8, %v415_v5  ;;  %v1570_v23 = vrot.slane %v585_v9, %v415_v5  ;;  %v271_v0 = vld [vmem:[%s1542_s7 + $0x80] sm:$0xff]  ;;  %v272_v1 = vld [vmem:[%s1542_s7 + $0x88] sm:$0xff]  ;;  %s1243_s27 = sshll.u32 %s1332_s20, 4  ;;  %s1244_s27 = int_to_ptr.vmem [resolvable:$false] %s1243_s27 }
  0x78   : > { %v441_v25 = vsub.f32 %v255_v7, %v1553_v13  ;;  %v442_v26 = vsub.f32 %v256_v15, %v1558_v16  ;;  %v1575_v27 = vrot.slane %v399_v8, %v419_v6  ;;  %v1577_v28 = vrot.slane %v585_v9, %v419_v6  ;;  %v273_v6 = vld [vmem:[%s1542_s7 + $0x90] sm:$0xff]  ;;  %v274_v7 = vld [vmem:[%s1542_s7 + $0x98] sm:$0xff]  ;;  %v276_v15 = vld [vmem:[%s1542_s7 + $0xa8] sm:$0xff]  ;;  %p1241_p11 = pnand %p1240_p5, %p2260_p10  ;;  %s1245_s9 = scalar_lea.vmem %s1244_s27, 36864 }
  0x79   : > { %v443_v30 = vsub.f32 %v257_v18, %v1564_v20  ;;  %v444_v31 = vsub.f32 %v258_v19, %v1568_v22  ;;  %v1582_v32 = vrot.slane %v399_v8, %v423_v10  ;;  %v1584_v33 = vrot.slane %v585_v9, %v423_v10  ;;  %p1246_p0 = scmp.lt.s32.totalorder %s2179_s26, %s1244_s27  ;;  %p1247_p6 = scmp.lt.s32.totalorder %s1245_s9, %s1239_s28 }
  0x7a   : > { %v627_v35 = vmul.f32 %v1555_v14, %v441_v25  ;;  %v628_v36 = vmul.f32 %v1560_v17, %v442_v26  ;;  %v445_v37 = vsub.f32 %v259_v24, %v1575_v27  ;;  %v1590_v38 = vrot.slane %v399_v8, %v427_v11  ;;  %v277_v26 = vld [vmem:[%s1542_s7 + $0xb0] sm:$0xff]  ;;  %p1242_p1 = pneg %p1241_p11 }
  0x7b   : > { %v629_v42 = vmul.f32 %v1566_v21, %v443_v30  ;;  %v630_v43 = vmul.f32 %v1570_v23, %v444_v31  ;;  %v446_v44 = vsub.f32 %v260_v29, %v1582_v32  ;;  %v1598_v45 = vrot.slane %v585_v9, %v427_v11  ;;  %p1248_p9 = por %p1247_p6, %p1246_p0 }
  0x7c   : > { %771 = vst [vmem:[%s1605_s21] sm:$0xff] %v627_v35  ;;  %772 = vst [vmem:[%s1605_s21 + $0x8] sm:$0xff] %v628_v36  ;;  %v631_v49 = vmul.f32 %v1577_v28, %v445_v37  ;;  %v447_v50 = vsub.f32 %v261_v34, %v1590_v38  ;;  %v1611_v51 = vrot.slane %v399_v8, %v431_v12  ;;  %v275_v8 = vld [vmem:[%s1542_s7 + $0xa0] sm:$0xff]  ;;  %v278_v35 = vld [vmem:[%s1542_s7 + $0xb8] sm:$0xff] }
  0x7d   : > { %v1613_v52 = vrot.slane %v585_v9, %v431_v12  ;;  %773 = vst [vmem:[%s1605_s21 + $0x10] sm:$0xff] %v629_v42  ;;  %774 = vst [vmem:[%s1605_s21 + $0x18] sm:$0xff] %v630_v43  ;;  %v632_v54 = vmul.f32 %v1584_v33, %v446_v44  ;;  %v449_v55 = vsub.f32 %v263_v39, %v1553_v13  ;;  %v279_v36 = vld [vmem:[%s1542_s7 + $0xc0] sm:$0xff]  ;;  %v280_v37 = vld [vmem:[%s1542_s7 + $0xc8] sm:$0xff]  ;;  %p1249_p2 = pnand %p1248_p9, %p1242_p1 }
  0x7e   : > { %v450_v56 = vsub.f32 %v264_v40, %v1558_v16  ;;  %v451_v57 = vsub.f32 %v265_v41, %v1564_v20  ;;  %775 = vst [vmem:[%s1605_s21 + $0x20] sm:$0xff] %v631_v49  ;;  %v633_v59 = vmul.f32 %v1598_v45, %v447_v50  ;;  %v448_v60 = vsub.f32 %v262_v46, %v1611_v51  ;;  %v281_v43 = vld [vmem:[%s1542_s7 + $0xd0] sm:$0xff]  ;;  %v282_v44 = vld [vmem:[%s1542_s7 + $0xd8] sm:$0xff]  ;;  %v283_v46 = vld [vmem:[%s1542_s7 + $0xe0] sm:$0xff] }
  0x7f   : > { %v452_v61 = vsub.f32 %v266_v47, %v1568_v22  ;;  %v453_v62 = vsub.f32 %v267_v48, %v1575_v27  ;;  %776 = vst [vmem:[%s1605_s21 + $0x28] sm:$0xff] %v632_v54  ;;  %v635_v2 = vmul.f32 %v1555_v14, %v449_v55  ;;  %v454_v5 = vsub.f32 %v268_v53, %v1582_v32  ;;  %v284_v53 = vld [vmem:[%s1542_s7 + $0xe8] sm:$0xff] }
  0x80   : > { %v636_v3 = vmul.f32 %v1560_v17, %v450_v56  ;;  %v637_v4 = vmul.f32 %v1566_v21, %v451_v57  ;;  %777 = vst [vmem:[%s1605_s21 + $0x30] sm:$0xff] %v633_v59  ;;  %v634_v9 = vmul.f32 %v1613_v52, %v448_v60  ;;  %v455_v12 = vsub.f32 %v269_v58, %v1590_v38  ;;  %v285_v58 = vld [vmem:[%s1542_s7 + $0xf0] sm:$0xff] }
  0x81   : > { %v638_v10 = vmul.f32 %v1570_v23, %v452_v61  ;;  %v639_v11 = vmul.f32 %v1577_v28, %v453_v62  ;;  %780 = vst [vmem:[%s1605_s21 + $0x40] sm:$0xff] %v635_v2  ;;  %v640_v18 = vmul.f32 %v1584_v33, %v454_v5  ;;  %v456_v19 = vsub.f32 %v270_v63, %v1611_v51  ;;  %v286_v63 = vld [vmem:[%s1542_s7 + $0xf8] sm:$0xff] }
  0x82   : > { %781 = vst [vmem:[%s1605_s21 + $0x48] sm:$0xff] %v636_v3  ;;  %782 = vst [vmem:[%s1605_s21 + $0x50] sm:$0xff] %v637_v4  ;;  %v457_v24 = vsub.f32 %v271_v0, %v1553_v13  ;;  %v458_v25 = vsub.f32 %v272_v1, %v1558_v16  ;;  %v641_v29 = vmul.f32 %v1598_v45, %v455_v12  ;;  %v287_v0 = vld [vmem:[%s1542_s7 + $0x100] sm:$0xff]  ;;  %v288_v1 = vld [vmem:[%s1542_s7 + $0x108] sm:$0xff] }
  0x83   : > { %779 = vst.msk [vmem:[%s1605_s21 + $0x38] sm:$0xff] %vm778_vm0, %v634_v9  ;;  %783 = vst [vmem:[%s1605_s21 + $0x58] sm:$0xff] %v638_v10  ;;  %v459_v30 = vsub.f32 %v273_v6, %v1564_v20  ;;  %v460_v31 = vsub.f32 %v274_v7, %v1568_v22  ;;  %v461_v34 = vsub.f32 %v275_v8, %v1575_v27  ;;  %v289_v6 = vld [vmem:[%s1542_s7 + $0x110] sm:$0xff]  ;;  %v290_v7 = vld [vmem:[%s1542_s7 + $0x118] sm:$0xff] }
  0x84   : > { %784 = vst [vmem:[%s1605_s21 + $0x60] sm:$0xff] %v639_v11  ;;  %785 = vst [vmem:[%s1605_s21 + $0x68] sm:$0xff] %v640_v18  ;;  %v642_v39 = vmul.f32 %v1613_v52, %v456_v19  ;;  %v643_v40 = vmul.f32 %v1555_v14, %v457_v24  ;;  %v644_v41 = vmul.f32 %v1560_v17, %v458_v25  ;;  %v291_v8 = vld [vmem:[%s1542_s7 + $0x120] sm:$0xff] }
  0x85   : > { %v462_v42 = vsub.f32 %v276_v15, %v1582_v32  ;;  %786 = vst [vmem:[%s1605_s21 + $0x70] sm:$0xff] %v641_v29  ;;  %v645_v47 = vmul.f32 %v1566_v21, %v459_v30  ;;  %v646_v48 = vmul.f32 %v1570_v23, %v460_v31  ;;  %v647_v49 = vmul.f32 %v1577_v28, %v461_v34  ;;  %v292_v15 = vld [vmem:[%s1542_s7 + $0x128] sm:$0xff] }
  0x86   : > { %v463_v50 = vsub.f32 %v277_v26, %v1590_v38  ;;  %787 = vst.msk [vmem:[%s1605_s21 + $0x78] sm:$0xff] %vm778_vm0, %v642_v39  ;;  %788 = vst [vmem:[%s1605_s21 + $0x80] sm:$0xff] %v643_v40  ;;  %v464_v55 = vsub.f32 %v278_v35, %v1611_v51  ;;  %v465_v56 = vsub.f32 %v279_v36, %v1553_v13  ;;  %v293_v26 = vld [vmem:[%s1542_s7 + $0x130] sm:$0xff]  ;;  %v294_v35 = vld [vmem:[%s1542_s7 + $0x138] sm:$0xff] }
  0x87   : > { %789 = vst [vmem:[%s1605_s21 + $0x88] sm:$0xff] %v644_v41  ;;  %v648_v54 = vmul.f32 %v1584_v33, %v462_v42  ;;  %v466_v57 = vsub.f32 %v280_v37, %v1558_v16  ;;  %790 = vst [vmem:[%s1605_s21 + $0x90] sm:$0xff] %v645_v47  ;;  %v467_v60 = vsub.f32 %v281_v43, %v1564_v20  ;;  %v295_v36 = vld [vmem:[%s1542_s7 + $0x140] sm:$0xff]  ;;  %v296_v37 = vld [vmem:[%s1542_s7 + $0x148] sm:$0xff] }
  0x88   : > { %791 = vst [vmem:[%s1605_s21 + $0x98] sm:$0xff] %v646_v48  ;;  %792 = vst [vmem:[%s1605_s21 + $0xa0] sm:$0xff] %v647_v49  ;;  %v649_v59 = vmul.f32 %v1598_v45, %v463_v50  ;;  %v468_v61 = vsub.f32 %v282_v44, %v1568_v22  ;;  %v469_v62 = vsub.f32 %v283_v46, %v1575_v27  ;;  %v297_v43 = vld [vmem:[%s1542_s7 + $0x150] sm:$0xff]  ;;  %v298_v44 = vld [vmem:[%s1542_s7 + $0x158] sm:$0xff] }
  0x89   : > { %793 = vst [vmem:[%s1605_s21 + $0xa8] sm:$0xff] %v648_v54  ;;  %v650_v2 = vmul.f32 %v1613_v52, %v464_v55  ;;  %v651_v3 = vmul.f32 %v1555_v14, %v465_v56  ;;  %v652_v4 = vmul.f32 %v1560_v17, %v466_v57  ;;  %v470_v5 = vsub.f32 %v284_v53, %v1582_v32  ;;  %v299_v46 = vld [vmem:[%s1542_s7 + $0x160] sm:$0xff]  ;;  %v300_v53 = vld [vmem:[%s1542_s7 + $0x168] sm:$0xff] }
  0x8a   : > { %794 = vst [vmem:[%s1605_s21 + $0xb0] sm:$0xff] %v649_v59  ;;  %v653_v9 = vmul.f32 %v1566_v21, %v467_v60  ;;  %v654_v10 = vmul.f32 %v1570_v23, %v468_v61  ;;  %v655_v11 = vmul.f32 %v1577_v28, %v469_v62  ;;  %v471_v12 = vsub.f32 %v285_v58, %v1590_v38  ;;  %v301_v58 = vld [vmem:[%s1542_s7 + $0x170] sm:$0xff] }
  0x8b   : > { %795 = vst.msk [vmem:[%s1605_s21 + $0xb8] sm:$0xff] %vm778_vm0, %v650_v2  ;;  %796 = vst [vmem:[%s1605_s21 + $0xc0] sm:$0xff] %v651_v3  ;;  %v656_v18 = vmul.f32 %v1584_v33, %v470_v5  ;;  %v472_v19 = vsub.f32 %v286_v63, %v1611_v51  ;;  %v473_v24 = vsub.f32 %v287_v0, %v1553_v13  ;;  %v302_v63 = vld [vmem:[%s1542_s7 + $0x178] sm:$0xff]  ;;  %v303_v0 = vld [vmem:[%s1542_s7 + $0x180] sm:$0xff] }
  0x8c   : > { %797 = vst [vmem:[%s1605_s21 + $0xc8] sm:$0xff] %v652_v4  ;;  %v474_v25 = vsub.f32 %v288_v1, %v1558_v16  ;;  %798 = vst [vmem:[%s1605_s21 + $0xd0] sm:$0xff] %v653_v9  ;;  %v657_v29 = vmul.f32 %v1598_v45, %v471_v12  ;;  %v475_v30 = vsub.f32 %v289_v6, %v1564_v20  ;;  %v304_v1 = vld [vmem:[%s1542_s7 + $0x188] sm:$0xff]  ;;  %v305_v6 = vld [vmem:[%s1542_s7 + $0x190] sm:$0xff] }
  0x8d   : > { %799 = vst [vmem:[%s1605_s21 + $0xd8] sm:$0xff] %v654_v10  ;;  %800 = vst [vmem:[%s1605_s21 + $0xe0] sm:$0xff] %v655_v11  ;;  %v476_v31 = vsub.f32 %v290_v7, %v1568_v22  ;;  %v477_v34 = vsub.f32 %v291_v8, %v1575_v27  ;;  %v658_v39 = vmul.f32 %v1613_v52, %v472_v19  ;;  %v306_v7 = vld [vmem:[%s1542_s7 + $0x198] sm:$0xff]  ;;  %v307_v8 = vld [vmem:[%s1542_s7 + $0x1a0] sm:$0xff] }
  0x8e   : > { %801 = vst [vmem:[%s1605_s21 + $0xe8] sm:$0xff] %v656_v18  ;;  %v659_v40 = vmul.f32 %v1555_v14, %v473_v24  ;;  %v660_v41 = vmul.f32 %v1560_v17, %v474_v25  ;;  %v478_v42 = vsub.f32 %v292_v15, %v1582_v32  ;;  %802 = vst [vmem:[%s1605_s21 + $0xf0] sm:$0xff] %v657_v29  ;;  %v308_v15 = vld [vmem:[%s1542_s7 + $0x1a8] sm:$0xff] }
  0x8f   : > { %v661_v47 = vmul.f32 %v1566_v21, %v475_v30  ;;  %v662_v48 = vmul.f32 %v1570_v23, %v476_v31  ;;  %v663_v49 = vmul.f32 %v1577_v28, %v477_v34  ;;  %v479_v50 = vsub.f32 %v293_v26, %v1590_v38  ;;  %803 = vst.msk [vmem:[%s1605_s21 + $0xf8] sm:$0xff] %vm778_vm0, %v658_v39  ;;  %v309_v26 = vld [vmem:[%s1542_s7 + $0x1b0] sm:$0xff] }
  0x90   : > { %804 = vst [vmem:[%s1605_s21 + $0x100] sm:$0xff] %v659_v40  ;;  %805 = vst [vmem:[%s1605_s21 + $0x108] sm:$0xff] %v660_v41  ;;  %v664_v54 = vmul.f32 %v1584_v33, %v478_v42  ;;  %v480_v55 = vsub.f32 %v294_v35, %v1611_v51  ;;  %v481_v56 = vsub.f32 %v295_v36, %v1553_v13  ;;  %v310_v35 = vld [vmem:[%s1542_s7 + $0x1b8] sm:$0xff]  ;;  %v311_v36 = vld [vmem:[%s1542_s7 + $0x1c0] sm:$0xff] }
  0x91   : > { %v482_v57 = vsub.f32 %v296_v37, %v1558_v16  ;;  %806 = vst [vmem:[%s1605_s21 + $0x110] sm:$0xff] %v661_v47  ;;  %807 = vst [vmem:[%s1605_s21 + $0x118] sm:$0xff] %v662_v48  ;;  %v665_v59 = vmul.f32 %v1598_v45, %v479_v50  ;;  %v483_v60 = vsub.f32 %v297_v43, %v1564_v20  ;;  %v312_v37 = vld [vmem:[%s1542_s7 + $0x1c8] sm:$0xff]  ;;  %v313_v43 = vld [vmem:[%s1542_s7 + $0x1d0] sm:$0xff] }
  0x92   : > { %808 = vst [vmem:[%s1605_s21 + $0x120] sm:$0xff] %v663_v49  ;;  %v484_v61 = vsub.f32 %v298_v44, %v1568_v22  ;;  %v485_v62 = vsub.f32 %v299_v46, %v1575_v27  ;;  %809 = vst [vmem:[%s1605_s21 + $0x128] sm:$0xff] %v664_v54  ;;  %v666_v2 = vmul.f32 %v1613_v52, %v480_v55  ;;  %v314_v44 = vld [vmem:[%s1542_s7 + $0x1d8] sm:$0xff]  ;;  %v315_v46 = vld [vmem:[%s1542_s7 + $0x1e0] sm:$0xff] }
  0x93   : > { %v667_v3 = vmul.f32 %v1555_v14, %v481_v56  ;;  %v668_v4 = vmul.f32 %v1560_v17, %v482_v57  ;;  %v486_v5 = vsub.f32 %v300_v53, %v1582_v32  ;;  %810 = vst [vmem:[%s1605_s21 + $0x130] sm:$0xff] %v665_v59  ;;  %v669_v9 = vmul.f32 %v1566_v21, %v483_v60  ;;  %v316_v53 = vld [vmem:[%s1542_s7 + $0x1e8] sm:$0xff] }
  0x94   : > { %v670_v10 = vmul.f32 %v1570_v23, %v484_v61  ;;  %v671_v11 = vmul.f32 %v1577_v28, %v485_v62  ;;  %v487_v12 = vsub.f32 %v301_v58, %v1590_v38  ;;  %811 = vst.msk [vmem:[%s1605_s21 + $0x138] sm:$0xff] %vm778_vm0, %v666_v2  ;;  %v488_v19 = vsub.f32 %v302_v63, %v1611_v51  ;;  %v317_v58 = vld [vmem:[%s1542_s7 + $0x1f0] sm:$0xff]  ;;  %v318_v63 = vld [vmem:[%s1542_s7 + $0x1f8] sm:$0xff] }
  0x95   : > { %812 = vst [vmem:[%s1605_s21 + $0x140] sm:$0xff] %v667_v3  ;;  %813 = vst [vmem:[%s1605_s21 + $0x148] sm:$0xff] %v668_v4  ;;  %v672_v18 = vmul.f32 %v1584_v33, %v486_v5  ;;  %v489_v24 = vsub.f32 %v303_v0, %v1553_v13  ;;  %v490_v25 = vsub.f32 %v304_v1, %v1558_v16  ;;  %v319_v0 = vld [vmem:[%s1542_s7 + $0x200] sm:$0xff]  ;;  %v320_v1 = vld [vmem:[%s1542_s7 + $0x208] sm:$0xff] }
  0x96   : > { %814 = vst [vmem:[%s1605_s21 + $0x150] sm:$0xff] %v669_v9  ;;  %815 = vst [vmem:[%s1605_s21 + $0x158] sm:$0xff] %v670_v10  ;;  %v673_v29 = vmul.f32 %v1598_v45, %v487_v12  ;;  %v491_v30 = vsub.f32 %v305_v6, %v1564_v20  ;;  %v492_v31 = vsub.f32 %v306_v7, %v1568_v22  ;;  %v321_v6 = vld [vmem:[%s1542_s7 + $0x210] sm:$0xff]  ;;  %v322_v7 = vld [vmem:[%s1542_s7 + $0x218] sm:$0xff] }
  0x97   : > { %816 = vst [vmem:[%s1605_s21 + $0x160] sm:$0xff] %v671_v11  ;;  %v493_v34 = vsub.f32 %v307_v8, %v1575_v27  ;;  %817 = vst [vmem:[%s1605_s21 + $0x168] sm:$0xff] %v672_v18  ;;  %v674_v39 = vmul.f32 %v1613_v52, %v488_v19  ;;  %v675_v40 = vmul.f32 %v1555_v14, %v489_v24  ;;  %v323_v8 = vld [vmem:[%s1542_s7 + $0x220] sm:$0xff] }
  0x98   : > { %v676_v41 = vmul.f32 %v1560_v17, %v490_v25  ;;  %v494_v42 = vsub.f32 %v308_v15, %v1582_v32  ;;  %818 = vst [vmem:[%s1605_s21 + $0x170] sm:$0xff] %v673_v29  ;;  %v677_v47 = vmul.f32 %v1566_v21, %v491_v30  ;;  %v678_v48 = vmul.f32 %v1570_v23, %v492_v31  ;;  %v324_v15 = vld [vmem:[%s1542_s7 + $0x228] sm:$0xff] }
  0x99   : > { %v679_v49 = vmul.f32 %v1577_v28, %v493_v34  ;;  %v495_v50 = vsub.f32 %v309_v26, %v1590_v38  ;;  %819 = vst.msk [vmem:[%s1605_s21 + $0x178] sm:$0xff] %vm778_vm0, %v674_v39  ;;  %820 = vst [vmem:[%s1605_s21 + $0x180] sm:$0xff] %v675_v40  ;;  %v496_v55 = vsub.f32 %v310_v35, %v1611_v51  ;;  %v325_v26 = vld [vmem:[%s1542_s7 + $0x230] sm:$0xff]  ;;  %v326_v35 = vld [vmem:[%s1542_s7 + $0x238] sm:$0xff] }
  0x9a   : > { %821 = vst [vmem:[%s1605_s21 + $0x188] sm:$0xff] %v676_v41  ;;  %v680_v54 = vmul.f32 %v1584_v33, %v494_v42  ;;  %v497_v56 = vsub.f32 %v311_v36, %v1553_v13  ;;  %v498_v57 = vsub.f32 %v312_v37, %v1558_v16  ;;  %822 = vst [vmem:[%s1605_s21 + $0x190] sm:$0xff] %v677_v47  ;;  %v327_v36 = vld [vmem:[%s1542_s7 + $0x240] sm:$0xff]  ;;  %v328_v37 = vld [vmem:[%s1542_s7 + $0x248] sm:$0xff] }
  0x9b   : > { %823 = vst [vmem:[%s1605_s21 + $0x198] sm:$0xff] %v678_v48  ;;  %824 = vst [vmem:[%s1605_s21 + $0x1a0] sm:$0xff] %v679_v49  ;;  %v681_v59 = vmul.f32 %v1598_v45, %v495_v50  ;;  %v499_v60 = vsub.f32 %v313_v43, %v1564_v20  ;;  %v500_v61 = vsub.f32 %v314_v44, %v1568_v22  ;;  %v329_v43 = vld [vmem:[%s1542_s7 + $0x250] sm:$0xff]  ;;  %v330_v44 = vld [vmem:[%s1542_s7 + $0x258] sm:$0xff] }
  0x9c   : > { %v501_v62 = vsub.f32 %v315_v46, %v1575_v27  ;;  %825 = vst [vmem:[%s1605_s21 + $0x1a8] sm:$0xff] %v680_v54  ;;  %v682_v2 = vmul.f32 %v1613_v52, %v496_v55  ;;  %v683_v3 = vmul.f32 %v1555_v14, %v497_v56  ;;  %v684_v4 = vmul.f32 %v1560_v17, %v498_v57  ;;  %v331_v46 = vld [vmem:[%s1542_s7 + $0x260] sm:$0xff] }
  0x9d   : > { %v502_v5 = vsub.f32 %v316_v53, %v1582_v32  ;;  %826 = vst [vmem:[%s1605_s21 + $0x1b0] sm:$0xff] %v681_v59  ;;  %v685_v9 = vmul.f32 %v1566_v21, %v499_v60  ;;  %v686_v10 = vmul.f32 %v1570_v23, %v500_v61  ;;  %v503_v12 = vsub.f32 %v317_v58, %v1590_v38  ;;  %v332_v53 = vld [vmem:[%s1542_s7 + $0x268] sm:$0xff]  ;;  %v333_v58 = vld [vmem:[%s1542_s7 + $0x270] sm:$0xff] }
  0x9e   : > { %v687_v11 = vmul.f32 %v1577_v28, %v501_v62  ;;  %827 = vst.msk [vmem:[%s1605_s21 + $0x1b8] sm:$0xff] %vm778_vm0, %v682_v2  ;;  %828 = vst [vmem:[%s1605_s21 + $0x1c0] sm:$0xff] %v683_v3  ;;  %v504_v19 = vsub.f32 %v318_v63, %v1611_v51  ;;  %v505_v24 = vsub.f32 %v319_v0, %v1553_v13  ;;  %v334_v63 = vld [vmem:[%s1542_s7 + $0x278] sm:$0xff]  ;;  %v335_v0 = vld [vmem:[%s1542_s7 + $0x280] sm:$0xff] }
  0x9f   : > { %829 = vst [vmem:[%s1605_s21 + $0x1c8] sm:$0xff] %v684_v4  ;;  %v688_v18 = vmul.f32 %v1584_v33, %v502_v5  ;;  %v506_v25 = vsub.f32 %v320_v1, %v1558_v16  ;;  %830 = vst [vmem:[%s1605_s21 + $0x1d0] sm:$0xff] %v685_v9  ;;  %v689_v29 = vmul.f32 %v1598_v45, %v503_v12  ;;  %v336_v1 = vld [vmem:[%s1542_s7 + $0x288] sm:$0xff] }
  0xa0   : > { %831 = vst [vmem:[%s1605_s21 + $0x1d8] sm:$0xff] %v686_v10  ;;  %832 = vst [vmem:[%s1605_s21 + $0x1e0] sm:$0xff] %v687_v11  ;;  %v507_v30 = vsub.f32 %v321_v6, %v1564_v20  ;;  %v508_v31 = vsub.f32 %v322_v7, %v1568_v22  ;;  %v509_v34 = vsub.f32 %v323_v8, %v1575_v27  ;;  %v337_v6 = vld [vmem:[%s1542_s7 + $0x290] sm:$0xff]  ;;  %v338_v7 = vld [vmem:[%s1542_s7 + $0x298] sm:$0xff] }
  0xa1   : > { %833 = vst [vmem:[%s1605_s21 + $0x1e8] sm:$0xff] %v688_v18  ;;  %v690_v39 = vmul.f32 %v1613_v52, %v504_v19  ;;  %v691_v40 = vmul.f32 %v1555_v14, %v505_v24  ;;  %v692_v41 = vmul.f32 %v1560_v17, %v506_v25  ;;  %v510_v42 = vsub.f32 %v324_v15, %v1582_v32  ;;  %v339_v8 = vld [vmem:[%s1542_s7 + $0x2a0] sm:$0xff]  ;;  %v340_v15 = vld [vmem:[%s1542_s7 + $0x2a8] sm:$0xff] }
  0xa2   : > { %834 = vst [vmem:[%s1605_s21 + $0x1f0] sm:$0xff] %v689_v29  ;;  %v693_v47 = vmul.f32 %v1566_v21, %v507_v30  ;;  %v694_v48 = vmul.f32 %v1570_v23, %v508_v31  ;;  %v695_v49 = vmul.f32 %v1577_v28, %v509_v34  ;;  %v511_v50 = vsub.f32 %v325_v26, %v1590_v38  ;;  %v341_v26 = vld [vmem:[%s1542_s7 + $0x2b0] sm:$0xff] }
  0xa3   : > { %835 = vst.msk [vmem:[%s1605_s21 + $0x1f8] sm:$0xff] %vm778_vm0, %v690_v39  ;;  %836 = vst [vmem:[%s1605_s21 + $0x200] sm:$0xff] %v691_v40  ;;  %v696_v54 = vmul.f32 %v1584_v33, %v510_v42  ;;  %v512_v55 = vsub.f32 %v326_v35, %v1611_v51  ;;  %v513_v56 = vsub.f32 %v327_v36, %v1553_v13  ;;  %v342_v35 = vld [vmem:[%s1542_s7 + $0x2b8] sm:$0xff]  ;;  %v343_v36 = vld [vmem:[%s1542_s7 + $0x2c0] sm:$0xff] }
  0xa4   : > { %837 = vst [vmem:[%s1605_s21 + $0x208] sm:$0xff] %v692_v41  ;;  %v514_v57 = vsub.f32 %v328_v37, %v1558_v16  ;;  %838 = vst [vmem:[%s1605_s21 + $0x210] sm:$0xff] %v693_v47  ;;  %v697_v59 = vmul.f32 %v1598_v45, %v511_v50  ;;  %v515_v60 = vsub.f32 %v329_v43, %v1564_v20  ;;  %v344_v37 = vld [vmem:[%s1542_s7 + $0x2c8] sm:$0xff]  ;;  %v345_v43 = vld [vmem:[%s1542_s7 + $0x2d0] sm:$0xff] }
  0xa5   : > { %839 = vst [vmem:[%s1605_s21 + $0x218] sm:$0xff] %v694_v48  ;;  %840 = vst [vmem:[%s1605_s21 + $0x220] sm:$0xff] %v695_v49  ;;  %v516_v61 = vsub.f32 %v330_v44, %v1568_v22  ;;  %v517_v62 = vsub.f32 %v331_v46, %v1575_v27  ;;  %v698_v2 = vmul.f32 %v1613_v52, %v512_v55  ;;  %v346_v44 = vld [vmem:[%s1542_s7 + $0x2d8] sm:$0xff]  ;;  %v347_v46 = vld [vmem:[%s1542_s7 + $0x2e0] sm:$0xff] }
  0xa6   : > { %841 = vst [vmem:[%s1605_s21 + $0x228] sm:$0xff] %v696_v54  ;;  %v699_v3 = vmul.f32 %v1555_v14, %v513_v56  ;;  %v700_v4 = vmul.f32 %v1560_v17, %v514_v57  ;;  %v518_v5 = vsub.f32 %v332_v53, %v1582_v32  ;;  %842 = vst [vmem:[%s1605_s21 + $0x230] sm:$0xff] %v697_v59  ;;  %v348_v53 = vld [vmem:[%s1542_s7 + $0x2e8] sm:$0xff] }
  0xa7   : > { %v701_v9 = vmul.f32 %v1566_v21, %v515_v60  ;;  %v702_v10 = vmul.f32 %v1570_v23, %v516_v61  ;;  %v703_v11 = vmul.f32 %v1577_v28, %v517_v62  ;;  %v519_v12 = vsub.f32 %v333_v58, %v1590_v38  ;;  %843 = vst.msk [vmem:[%s1605_s21 + $0x238] sm:$0xff] %vm778_vm0, %v698_v2  ;;  %v349_v58 = vld [vmem:[%s1542_s7 + $0x2f0] sm:$0xff] }
  0xa8   : > { %844 = vst [vmem:[%s1605_s21 + $0x240] sm:$0xff] %v699_v3  ;;  %845 = vst [vmem:[%s1605_s21 + $0x248] sm:$0xff] %v700_v4  ;;  %v704_v18 = vmul.f32 %v1584_v33, %v518_v5  ;;  %v520_v19 = vsub.f32 %v334_v63, %v1611_v51  ;;  %v521_v24 = vsub.f32 %v335_v0, %v1553_v13  ;;  %v350_v63 = vld [vmem:[%s1542_s7 + $0x2f8] sm:$0xff]  ;;  %v351_v0 = vld [vmem:[%s1542_s7 + $0x300] sm:$0xff] }
  0xa9   : > { %v522_v25 = vsub.f32 %v336_v1, %v1558_v16  ;;  %846 = vst [vmem:[%s1605_s21 + $0x250] sm:$0xff] %v701_v9  ;;  %847 = vst [vmem:[%s1605_s21 + $0x258] sm:$0xff] %v702_v10  ;;  %v705_v29 = vmul.f32 %v1598_v45, %v519_v12  ;;  %v523_v30 = vsub.f32 %v337_v6, %v1564_v20  ;;  %v352_v1 = vld [vmem:[%s1542_s7 + $0x308] sm:$0xff]  ;;  %v353_v6 = vld [vmem:[%s1542_s7 + $0x310] sm:$0xff] }
  0xaa   : > { %848 = vst [vmem:[%s1605_s21 + $0x260] sm:$0xff] %v703_v11  ;;  %v524_v31 = vsub.f32 %v338_v7, %v1568_v22  ;;  %v525_v34 = vsub.f32 %v339_v8, %v1575_v27  ;;  %849 = vst [vmem:[%s1605_s21 + $0x268] sm:$0xff] %v704_v18  ;;  %v706_v39 = vmul.f32 %v1613_v52, %v520_v19  ;;  %v354_v7 = vld [vmem:[%s1542_s7 + $0x318] sm:$0xff]  ;;  %v355_v8 = vld [vmem:[%s1542_s7 + $0x320] sm:$0xff] }
  0xab   : > { %v707_v40 = vmul.f32 %v1555_v14, %v521_v24  ;;  %v708_v41 = vmul.f32 %v1560_v17, %v522_v25  ;;  %v526_v42 = vsub.f32 %v340_v15, %v1582_v32  ;;  %850 = vst [vmem:[%s1605_s21 + $0x270] sm:$0xff] %v705_v29  ;;  %v709_v47 = vmul.f32 %v1566_v21, %v523_v30  ;;  %v356_v15 = vld [vmem:[%s1542_s7 + $0x328] sm:$0xff] }
  0xac   : > { %v710_v48 = vmul.f32 %v1570_v23, %v524_v31  ;;  %v711_v49 = vmul.f32 %v1577_v28, %v525_v34  ;;  %v527_v50 = vsub.f32 %v341_v26, %v1590_v38  ;;  %851 = vst.msk [vmem:[%s1605_s21 + $0x278] sm:$0xff] %vm778_vm0, %v706_v39  ;;  %v528_v55 = vsub.f32 %v342_v35, %v1611_v51  ;;  %v357_v26 = vld [vmem:[%s1542_s7 + $0x330] sm:$0xff]  ;;  %v358_v35 = vld [vmem:[%s1542_s7 + $0x338] sm:$0xff] }
  0xad   : > { %852 = vst [vmem:[%s1605_s21 + $0x280] sm:$0xff] %v707_v40  ;;  %853 = vst [vmem:[%s1605_s21 + $0x288] sm:$0xff] %v708_v41  ;;  %v712_v54 = vmul.f32 %v1584_v33, %v526_v42  ;;  %v529_v56 = vsub.f32 %v343_v36, %v1553_v13  ;;  %v530_v57 = vsub.f32 %v344_v37, %v1558_v16  ;;  %v359_v36 = vld [vmem:[%s1542_s7 + $0x340] sm:$0xff]  ;;  %v360_v37 = vld [vmem:[%s1542_s7 + $0x348] sm:$0xff] }
  0xae   : > { %854 = vst [vmem:[%s1605_s21 + $0x290] sm:$0xff] %v709_v47  ;;  %855 = vst [vmem:[%s1605_s21 + $0x298] sm:$0xff] %v710_v48  ;;  %v713_v59 = vmul.f32 %v1598_v45, %v527_v50  ;;  %v531_v60 = vsub.f32 %v345_v43, %v1564_v20  ;;  %v532_v61 = vsub.f32 %v346_v44, %v1568_v22  ;;  %v361_v43 = vld [vmem:[%s1542_s7 + $0x350] sm:$0xff]  ;;  %v362_v44 = vld [vmem:[%s1542_s7 + $0x358] sm:$0xff] }
  0xaf   : > { %856 = vst [vmem:[%s1605_s21 + $0x2a0] sm:$0xff] %v711_v49  ;;  %v533_v62 = vsub.f32 %v347_v46, %v1575_v27  ;;  %857 = vst [vmem:[%s1605_s21 + $0x2a8] sm:$0xff] %v712_v54  ;;  %v714_v2 = vmul.f32 %v1613_v52, %v528_v55  ;;  %v715_v3 = vmul.f32 %v1555_v14, %v529_v56  ;;  %v363_v46 = vld [vmem:[%s1542_s7 + $0x360] sm:$0xff] }
  0xb0   : > { %v716_v4 = vmul.f32 %v1560_v17, %v530_v57  ;;  %v534_v5 = vsub.f32 %v348_v53, %v1582_v32  ;;  %858 = vst [vmem:[%s1605_s21 + $0x2b0] sm:$0xff] %v713_v59  ;;  %v717_v9 = vmul.f32 %v1566_v21, %v531_v60  ;;  %v718_v10 = vmul.f32 %v1570_v23, %v532_v61  ;;  %v364_v53 = vld [vmem:[%s1542_s7 + $0x368] sm:$0xff] }
  0xb1   : > { %v719_v11 = vmul.f32 %v1577_v28, %v533_v62  ;;  %v535_v12 = vsub.f32 %v349_v58, %v1590_v38  ;;  %859 = vst.msk [vmem:[%s1605_s21 + $0x2b8] sm:$0xff] %vm778_vm0, %v714_v2  ;;  %860 = vst [vmem:[%s1605_s21 + $0x2c0] sm:$0xff] %v715_v3  ;;  %v536_v19 = vsub.f32 %v350_v63, %v1611_v51  ;;  %v365_v58 = vld [vmem:[%s1542_s7 + $0x370] sm:$0xff]  ;;  %v366_v63 = vld [vmem:[%s1542_s7 + $0x378] sm:$0xff] }
  0xb2   : > { %861 = vst [vmem:[%s1605_s21 + $0x2c8] sm:$0xff] %v716_v4  ;;  %v720_v18 = vmul.f32 %v1584_v33, %v534_v5  ;;  %v537_v24 = vsub.f32 %v351_v0, %v1553_v13  ;;  %v538_v25 = vsub.f32 %v352_v1, %v1558_v16  ;;  %862 = vst [vmem:[%s1605_s21 + $0x2d0] sm:$0xff] %v717_v9  ;;  %v367_v0 = vld [vmem:[%s1542_s7 + $0x380] sm:$0xff]  ;;  %v368_v1 = vld [vmem:[%s1542_s7 + $0x388] sm:$0xff] }
  0xb3   : > { %863 = vst [vmem:[%s1605_s21 + $0x2d8] sm:$0xff] %v718_v10  ;;  %864 = vst [vmem:[%s1605_s21 + $0x2e0] sm:$0xff] %v719_v11  ;;  %v721_v29 = vmul.f32 %v1598_v45, %v535_v12  ;;  %v539_v30 = vsub.f32 %v353_v6, %v1564_v20  ;;  %v540_v31 = vsub.f32 %v354_v7, %v1568_v22  ;;  %v369_v6 = vld [vmem:[%s1542_s7 + $0x390] sm:$0xff]  ;;  %v370_v7 = vld [vmem:[%s1542_s7 + $0x398] sm:$0xff] }
  0xb4   : > { %v541_v34 = vsub.f32 %v355_v8, %v1575_v27  ;;  %865 = vst [vmem:[%s1605_s21 + $0x2e8] sm:$0xff] %v720_v18  ;;  %v722_v39 = vmul.f32 %v1613_v52, %v536_v19  ;;  %v723_v40 = vmul.f32 %v1555_v14, %v537_v24  ;;  %v724_v41 = vmul.f32 %v1560_v17, %v538_v25  ;;  %v371_v8 = vld [vmem:[%s1542_s7 + $0x3a0] sm:$0xff] }
  0xb5   : > { %v542_v42 = vsub.f32 %v356_v15, %v1582_v32  ;;  %866 = vst [vmem:[%s1605_s21 + $0x2f0] sm:$0xff] %v721_v29  ;;  %v725_v47 = vmul.f32 %v1566_v21, %v539_v30  ;;  %v726_v48 = vmul.f32 %v1570_v23, %v540_v31  ;;  %v543_v50 = vsub.f32 %v357_v26, %v1590_v38  ;;  %v372_v15 = vld [vmem:[%s1542_s7 + $0x3a8] sm:$0xff]  ;;  %v373_v26 = vld [vmem:[%s1542_s7 + $0x3b0] sm:$0xff] }
  0xb6   : > { %v727_v49 = vmul.f32 %v1577_v28, %v541_v34  ;;  %867 = vst.msk [vmem:[%s1605_s21 + $0x2f8] sm:$0xff] %vm778_vm0, %v722_v39  ;;  %868 = vst [vmem:[%s1605_s21 + $0x300] sm:$0xff] %v723_v40  ;;  %v544_v55 = vsub.f32 %v358_v35, %v1611_v51  ;;  %v545_v56 = vsub.f32 %v359_v36, %v1553_v13  ;;  %v374_v35 = vld [vmem:[%s1542_s7 + $0x3b8] sm:$0xff]  ;;  %v375_v36 = vld [vmem:[%s1542_s7 + $0x3c0] sm:$0xff] }
  0xb7   : > { %869 = vst [vmem:[%s1605_s21 + $0x308] sm:$0xff] %v724_v41  ;;  %v728_v54 = vmul.f32 %v1584_v33, %v542_v42  ;;  %v546_v57 = vsub.f32 %v360_v37, %v1558_v16  ;;  %870 = vst [vmem:[%s1605_s21 + $0x310] sm:$0xff] %v725_v47  ;;  %v729_v59 = vmul.f32 %v1598_v45, %v543_v50  ;;  %v376_v37 = vld [vmem:[%s1542_s7 + $0x3c8] sm:$0xff] }
  0xb8   : > { %871 = vst [vmem:[%s1605_s21 + $0x318] sm:$0xff] %v726_v48  ;;  %872 = vst [vmem:[%s1605_s21 + $0x320] sm:$0xff] %v727_v49  ;;  %v547_v60 = vsub.f32 %v361_v43, %v1564_v20  ;;  %v548_v61 = vsub.f32 %v362_v44, %v1568_v22  ;;  %v549_v62 = vsub.f32 %v363_v46, %v1575_v27  ;;  %v377_v43 = vld [vmem:[%s1542_s7 + $0x3d0] sm:$0xff]  ;;  %v378_v44 = vld [vmem:[%s1542_s7 + $0x3d8] sm:$0xff] }
  0xb9   : > { %873 = vst [vmem:[%s1605_s21 + $0x328] sm:$0xff] %v728_v54  ;;  %v730_v2 = vmul.f32 %v1613_v52, %v544_v55  ;;  %v731_v3 = vmul.f32 %v1555_v14, %v545_v56  ;;  %v732_v4 = vmul.f32 %v1560_v17, %v546_v57  ;;  %v550_v5 = vsub.f32 %v364_v53, %v1582_v32  ;;  %v379_v46 = vld [vmem:[%s1542_s7 + $0x3e0] sm:$0xff]  ;;  %v380_v53 = vld [vmem:[%s1542_s7 + $0x3e8] sm:$0xff] }
  0xba   : > { %874 = vst [vmem:[%s1605_s21 + $0x330] sm:$0xff] %v729_v59  ;;  %v733_v9 = vmul.f32 %v1566_v21, %v547_v60  ;;  %v734_v10 = vmul.f32 %v1570_v23, %v548_v61  ;;  %v735_v11 = vmul.f32 %v1577_v28, %v549_v62  ;;  %v551_v12 = vsub.f32 %v365_v58, %v1590_v38  ;;  %v381_v58 = vld [vmem:[%s1542_s7 + $0x3f0] sm:$0xff] }
  0xbb   : > { %875 = vst.msk [vmem:[%s1605_s21 + $0x338] sm:$0xff] %vm778_vm0, %v730_v2  ;;  %876 = vst [vmem:[%s1605_s21 + $0x340] sm:$0xff] %v731_v3  ;;  %v736_v18 = vmul.f32 %v1584_v33, %v550_v5  ;;  %v552_v19 = vsub.f32 %v366_v63, %v1611_v51  ;;  %v553_v24 = vsub.f32 %v367_v0, %v1553_v13  ;;  %v382_v63 = vld [vmem:[%s1542_s7 + $0x3f8] sm:$0xff]  ;;  %v383_v0 = vld [vmem:[%s1542_s7 + $0x400] sm:$0xff] }
  0xbc   : > { %877 = vst [vmem:[%s1605_s21 + $0x348] sm:$0xff] %v732_v4  ;;  %v554_v25 = vsub.f32 %v368_v1, %v1558_v16  ;;  %878 = vst [vmem:[%s1605_s21 + $0x350] sm:$0xff] %v733_v9  ;;  %v737_v29 = vmul.f32 %v1598_v45, %v551_v12  ;;  %v555_v30 = vsub.f32 %v369_v6, %v1564_v20  ;;  %v384_v1 = vld [vmem:[%s1542_s7 + $0x408] sm:$0xff]  ;;  %v385_v6 = vld [vmem:[%s1542_s7 + $0x410] sm:$0xff] }
  0xbd   : > { %879 = vst [vmem:[%s1605_s21 + $0x358] sm:$0xff] %v734_v10  ;;  %880 = vst [vmem:[%s1605_s21 + $0x360] sm:$0xff] %v735_v11  ;;  %v556_v31 = vsub.f32 %v370_v7, %v1568_v22  ;;  %v557_v34 = vsub.f32 %v371_v8, %v1575_v27  ;;  %v738_v39 = vmul.f32 %v1613_v52, %v552_v19  ;;  %v386_v7 = vld [vmem:[%s1542_s7 + $0x418] sm:$0xff]  ;;  %v387_v8 = vld [vmem:[%s1542_s7 + $0x420] sm:$0xff] }
  0xbe   : > { %881 = vst [vmem:[%s1605_s21 + $0x368] sm:$0xff] %v736_v18  ;;  %v739_v40 = vmul.f32 %v1555_v14, %v553_v24  ;;  %v740_v41 = vmul.f32 %v1560_v17, %v554_v25  ;;  %v558_v42 = vsub.f32 %v372_v15, %v1582_v32  ;;  %882 = vst [vmem:[%s1605_s21 + $0x370] sm:$0xff] %v737_v29  ;;  %v388_v15 = vld [vmem:[%s1542_s7 + $0x428] sm:$0xff] }
  0xbf   : > { %v741_v47 = vmul.f32 %v1566_v21, %v555_v30  ;;  %v742_v48 = vmul.f32 %v1570_v23, %v556_v31  ;;  %v743_v49 = vmul.f32 %v1577_v28, %v557_v34  ;;  %v559_v50 = vsub.f32 %v373_v26, %v1590_v38  ;;  %883 = vst.msk [vmem:[%s1605_s21 + $0x378] sm:$0xff] %vm778_vm0, %v738_v39  ;;  %v389_v26 = vld [vmem:[%s1542_s7 + $0x430] sm:$0xff] }
  0xc0   : > { %884 = vst [vmem:[%s1605_s21 + $0x380] sm:$0xff] %v739_v40  ;;  %885 = vst [vmem:[%s1605_s21 + $0x388] sm:$0xff] %v740_v41  ;;  %v744_v54 = vmul.f32 %v1584_v33, %v558_v42  ;;  %v560_v55 = vsub.f32 %v374_v35, %v1611_v51  ;;  %v561_v56 = vsub.f32 %v375_v36, %v1553_v13  ;;  %v390_v35 = vld [vmem:[%s1542_s7 + $0x438] sm:$0xff]  ;;  %v391_v36 = vld [vmem:[%s1542_s7 + $0x440] sm:$0xff] }
  0xc1   : > { %v562_v57 = vsub.f32 %v376_v37, %v1558_v16  ;;  %886 = vst [vmem:[%s1605_s21 + $0x390] sm:$0xff] %v741_v47  ;;  %887 = vst [vmem:[%s1605_s21 + $0x398] sm:$0xff] %v742_v48  ;;  %v745_v59 = vmul.f32 %v1598_v45, %v559_v50  ;;  %v563_v60 = vsub.f32 %v377_v43, %v1564_v20  ;;  %v392_v37 = vld [vmem:[%s1542_s7 + $0x448] sm:$0xff]  ;;  %v393_v43 = vld [vmem:[%s1542_s7 + $0x450] sm:$0xff] }
  0xc2   : > { %888 = vst [vmem:[%s1605_s21 + $0x3a0] sm:$0xff] %v743_v49  ;;  %v564_v61 = vsub.f32 %v378_v44, %v1568_v22  ;;  %v565_v62 = vsub.f32 %v379_v46, %v1575_v27  ;;  %889 = vst [vmem:[%s1605_s21 + $0x3a8] sm:$0xff] %v744_v54  ;;  %v746_v2 = vmul.f32 %v1613_v52, %v560_v55  ;;  %v394_v44 = vld [vmem:[%s1542_s7 + $0x458] sm:$0xff]  ;;  %v395_v46 = vld [vmem:[%s1542_s7 + $0x460] sm:$0xff] }
  0xc3   : > { %v747_v3 = vmul.f32 %v1555_v14, %v561_v56  ;;  %v748_v4 = vmul.f32 %v1560_v17, %v562_v57  ;;  %v566_v5 = vsub.f32 %v380_v53, %v1582_v32  ;;  %890 = vst [vmem:[%s1605_s21 + $0x3b0] sm:$0xff] %v745_v59  ;;  %v749_v9 = vmul.f32 %v1566_v21, %v563_v60  ;;  %v396_v53 = vld [vmem:[%s1542_s7 + $0x468] sm:$0xff] }
  0xc4   : > { %v750_v10 = vmul.f32 %v1570_v23, %v564_v61  ;;  %v751_v11 = vmul.f32 %v1577_v28, %v565_v62  ;;  %v567_v12 = vsub.f32 %v381_v58, %v1590_v38  ;;  %891 = vst.msk [vmem:[%s1605_s21 + $0x3b8] sm:$0xff] %vm778_vm0, %v746_v2  ;;  %v568_v19 = vsub.f32 %v382_v63, %v1611_v51  ;;  %v397_v58 = vld [vmem:[%s1542_s7 + $0x470] sm:$0xff] }
  0xc5   : > { %892 = vst [vmem:[%s1605_s21 + $0x3c0] sm:$0xff] %v747_v3  ;;  %893 = vst [vmem:[%s1605_s21 + $0x3c8] sm:$0xff] %v748_v4  ;;  %v752_v18 = vmul.f32 %v1584_v33, %v566_v5  ;;  %v569_v24 = vsub.f32 %v383_v0, %v1553_v13  ;;  %v570_v25 = vsub.f32 %v384_v1, %v1558_v16 }
  0xc6   : > { %894 = vst [vmem:[%s1605_s21 + $0x3d0] sm:$0xff] %v749_v9  ;;  %895 = vst [vmem:[%s1605_s21 + $0x3d8] sm:$0xff] %v750_v10  ;;  %v753_v29 = vmul.f32 %v1598_v45, %v567_v12  ;;  %v571_v30 = vsub.f32 %v385_v6, %v1564_v20  ;;  %v572_v31 = vsub.f32 %v386_v7, %v1568_v22 }
  0xc7   : > { %896 = vst [vmem:[%s1605_s21 + $0x3e0] sm:$0xff] %v751_v11  ;;  %v573_v34 = vsub.f32 %v387_v8, %v1575_v27  ;;  %897 = vst [vmem:[%s1605_s21 + $0x3e8] sm:$0xff] %v752_v18  ;;  %v754_v39 = vmul.f32 %v1613_v52, %v568_v19  ;;  %v755_v40 = vmul.f32 %v1555_v14, %v569_v24 }
  0xc8   : > { %v756_v41 = vmul.f32 %v1560_v17, %v570_v25  ;;  %v574_v42 = vsub.f32 %v388_v15, %v1582_v32  ;;  %898 = vst [vmem:[%s1605_s21 + $0x3f0] sm:$0xff] %v753_v29  ;;  %v757_v47 = vmul.f32 %v1566_v21, %v571_v30  ;;  %v758_v48 = vmul.f32 %v1570_v23, %v572_v31 }
  0xc9   : > { %v759_v49 = vmul.f32 %v1577_v28, %v573_v34  ;;  %v575_v50 = vsub.f32 %v389_v26, %v1590_v38  ;;  %899 = vst.msk [vmem:[%s1605_s21 + $0x3f8] sm:$0xff] %vm778_vm0, %v754_v39  ;;  %900 = vst [vmem:[%s1605_s21 + $0x400] sm:$0xff] %v755_v40  ;;  %v576_v55 = vsub.f32 %v390_v35, %v1611_v51 }
  0xca   : > { %901 = vst [vmem:[%s1605_s21 + $0x408] sm:$0xff] %v756_v41  ;;  %v760_v54 = vmul.f32 %v1584_v33, %v574_v42  ;;  %v577_v56 = vsub.f32 %v391_v36, %v1553_v13  ;;  %v578_v57 = vsub.f32 %v392_v37, %v1558_v16  ;;  %902 = vst [vmem:[%s1605_s21 + $0x410] sm:$0xff] %v757_v47  ;;  %v398_v13 = vld [vmem:[%s1542_s7 + $0x478] sm:$0xff] }
  0xcb   : > { %903 = vst [vmem:[%s1605_s21 + $0x418] sm:$0xff] %v758_v48  ;;  %904 = vst [vmem:[%s1605_s21 + $0x420] sm:$0xff] %v759_v49  ;;  %v761_v59 = vmul.f32 %v1598_v45, %v575_v50  ;;  %v579_v60 = vsub.f32 %v393_v43, %v1564_v20  ;;  %v580_v61 = vsub.f32 %v394_v44, %v1568_v22 }
  0xcc   : > { %v581_v62 = vsub.f32 %v395_v46, %v1575_v27  ;;  %905 = vst [vmem:[%s1605_s21 + $0x428] sm:$0xff] %v760_v54  ;;  %v762_v16 = vmul.f32 %v1613_v52, %v576_v55  ;;  %v763_v63 = vmul.f32 %v1555_v14, %v577_v56  ;;  %v764_v0 = vmul.f32 %v1560_v17, %v578_v57 }
  0xcd   : > { %v582_v20 = vsub.f32 %v396_v53, %v1582_v32  ;;  %906 = vst [vmem:[%s1605_s21 + $0x430] sm:$0xff] %v761_v59  ;;  %v765_v22 = vmul.f32 %v1566_v21, %v579_v60  ;;  %v766_v27 = vmul.f32 %v1570_v23, %v580_v61  ;;  %v583_v14 = vsub.f32 %v397_v58, %v1590_v38 }
  0xce   : > { %v767_v1 = vmul.f32 %v1577_v28, %v581_v62  ;;  %907 = vst.msk [vmem:[%s1605_s21 + $0x438] sm:$0xff] %vm778_vm0, %v762_v16  ;;  %908 = vst [vmem:[%s1605_s21 + $0x440] sm:$0xff] %v763_v63  ;;  %v584_v32 = vsub.f32 %v398_v13, %v1611_v51 }
  0xcf   : > { %909 = vst [vmem:[%s1605_s21 + $0x448] sm:$0xff] %v764_v0  ;;  %v768_v17 = vmul.f32 %v1584_v33, %v582_v20  ;;  %910 = vst [vmem:[%s1605_s21 + $0x450] sm:$0xff] %v765_v22  ;;  %v769_v21 = vmul.f32 %v1598_v45, %v583_v14 }
  0xd0   : > { %911 = vst [vmem:[%s1605_s21 + $0x458] sm:$0xff] %v766_v27  ;;  %912 = vst [vmem:[%s1605_s21 + $0x460] sm:$0xff] %v767_v1  ;;  %v770_v23 = vmul.f32 %v1613_v52, %v584_v32 }
  0xd1   : > { %913 = vst [vmem:[%s1605_s21 + $0x468] sm:$0xff] %v768_v17  ;;  %914 = vst [vmem:[%s1605_s21 + $0x470] sm:$0xff] %v769_v21 }
  0xd2   : > { %915 = vst.msk [vmem:[%s1605_s21 + $0x478] sm:$0xff] %vm778_vm0, %v770_v23 }
  0xd3   : > { %1252 = shalt.err (!%p1249_p2)
}
  0xd4   : > { %s1253_s10 = scalar_lea.hbm %s2186_s8, 18432  ;;  %s1257_s5 = scalar_lea.hbm %s2241_s3, 36864 }
  0xd5   : > { %p1254_p8 = scmp.ne.s32.totalorder %s2186_s8, %s1253_s10  ;;  %p1258_p7 = scmp.lt.u32.totalorder %s2186_s8, %s2241_s3 }
  0xd6   : > { %p1259_p12 = scmp.lt.u32.totalorder %s1257_s5, %s1253_s10  ;;  %p1261_p5 = scmp.lt.u32.totalorder %s1253_s10, %s2186_s8 }
  0xd7   : > { %p1255_p13 = pnand %p1254_p8, %p2260_p10 }
  0xd8   : > { %p1260_p3 = por %p1259_p12, %p1258_p7 }
  0xd9   : > { %p1256_p4 = pneg %p1255_p13 }
  0xda   : > { %p1262_p11 = por %p1261_p5, %p1260_p3 }
  0xdc   : > { %p1263_p1 = pnand %p1262_p11, %p1256_p4 }
  0xde   : > { %1266 = shalt.err (!%p1263_p1)
}
  0xdf   : > { %s1333_s21 = smov 1024   ;;  %s1334_s23 = smov 64  }
  0xe0   : > { %1076 = dma.vmem_to_hbm [thread:$0]  (%p2260_p10), %s2179_s26, 18432, %s2186_s8, %s917_s11, %s1333_s21, %s1333_s21, %s1334_s23  }
  0xe1 PF: > { %s948_s15 = sand.u32 1, %s1305_s12   ;;  %p2261_p0 = scmp.ne.s32.totalorder %s2252_s25, 0 }
  0xe2   : > { %p2262_p6 = scmp.ge.s32.totalorder %s1325_s17, 2  ;;  %s949_s29 = scalar_lea.sflag [#allocation4], %s948_s15 }
  0xe4   : > { %p1090_p9 = pnand %p2262_p6, %p2261_p0 }
  0xe6   : > { %1300 = dma.done.wait (!%p1090_p9), %s949_s29, 18432  }
  0xe7   : > { %1302 = vsyncadd (!%p1090_p9), %s949_s29, 4294948864  ;;  %s20_s17 = sadd.s32 1, %s1325_s17   ;;  %s2263_s12 = smov %s1309_s13 }
  0xe8   : > { %p17_p2 = scmp.ge.s32.totalorder %s20_s17, 4   ;;  %s2264_s13 = smov %s1313_s14 }
  0xe9   : > { %s2265_s14 = smov %s1503_s4  ;;  %s2266_s15 = smov %s1321_s16 }
  0xea   : > { %s2267_s16 = smov %s2269_s22  ;;  %19 = sbr.rel (!%p17_p2) target bundleno = 7 (0x7), region = 87 }
  0xf1   :  { %954 = vsyncpa [#allocation3], 1 }
  0xf2   :  { %956 = vsyncpa [#allocation3 + $0x1], 1 }
  0xf3   :  { %957 = vsyncpa [#allocation6], 1 }
  0xf4   :  { %958 = vsyncpa [#allocation4], 1 }
  0xf5   :  { %960 = vsyncpa [#allocation4 + $0x1], 1 }

</bundles_post_ra>
